<compile_context>
chip_gen: v6e
topology: v6e:2x2x1
jax: 0.10.0
libtpu: 0.0.40
codegen_flags: <defaults>
</compile_context>

<pallas_src>
import jax
import jax.numpy as jnp
from jax.experimental import pallas as pl
from jax.experimental.pallas import tpu as pltpu


def _copy_kernel(x_ref, o_ref):
    # Identical block shapes and index_maps for input and output -> the body
    # is a plain full-tile copy; Pallas edge masking trims the output tail.
    o_ref[...] = x_ref[...]


def _round_up(v: int, m: int) -> int:
    return ((v + m - 1) // m) * m


def _round_down(v: int, m: int) -> int:
    return (v // m) * m


# Below this total size a fused lax slice beats a pallas_call launch.
_FAST_PATH_BYTES = 2 << 20


def _tile_budget_bytes() -> int:
    """Per-tile byte budget; bigger on fast-HBM / small-VMEM (v7x-class) parts."""
    budget = 4 << 20  # 4 MiB: 4 buffers x 4 MiB = 16 MiB, fits under the raised limit
    try:
        info = pltpu.get_tpu_info()
        vmem = getattr(info, "vmem_capacity_bytes", None)
        if vmem is not None and vmem <= (64 << 20):
            # v7x-class: ~3.2 TB/s HBM makes per-step overhead relatively larger;
            # 6 MiB tiles -> 24 MiB of buffers, still well under 64 MiB physical.
            budget = 6 << 20
    except Exception:
        pass
    return budget


def _pick_tiles(rows: int, l_out: int, itemsize: int, budget_bytes: int):
    """Pick (tr, tl): lane tile grows first, then sublane, within the byte budget."""
    sublane_q = 8 * max(1, 4 // itemsize)   # 8 f32 / 16 bf16 / 32 int8
    lane_q = 128
    budget_elems = max(budget_bytes // itemsize, sublane_q * lane_q)

    tl_full = _round_up(l_out, lane_q)       # multiple of 128 (masked tail is fine)
    tr_min = rows if rows <= sublane_q else sublane_q

    # 1) Grow the lane tile first: longer contiguous HBM bursts per DMA row
    #    segment and lane-dense unmasked vst for interior blocks.
    tl = min(tl_full, max(lane_q, _round_down(budget_elems // tr_min, lane_q)))
    # 2) Spend the rest of the budget on the sublane tile.
    tr_cap = budget_elems // tl
    if tr_cap >= rows:
        tr = rows                            # full extent is always legal
    else:
        tr = max(sublane_q, _round_down(tr_cap, sublane_q))

    # Guarantee >=2 blocks along one parallel axis when the array allows it,
    # so megacore (v7x) sharding has work for both TensorCores.
    if pl.cdiv(rows, tr) * pl.cdiv(l_out, tl) < 2:
        if l_out > lane_q:
            tl = _round_up(pl.cdiv(l_out, 2), lane_q)
        elif rows > sublane_q:
            tr = _round_up(pl.cdiv(rows, 2), sublane_q)
        # else: single tiny tile; nothing worth splitting.
    return tr, tl


def chomp1d(x: jax.Array, chomp_size: int, *, force_pallas: bool = False) -> jax.Array:
    """Pallas equivalent of Chomp1d.forward: x[:, :, :-chomp_size]."""
    assert chomp_size > 0, "chomp_size must be positive (matches PyTorch slice)"
    n, c, l = x.shape
    l_out = l - chomp_size
    assert l_out > 0, "chomp_size must be smaller than the sequence length"

    rows = n * c
    itemsize = jnp.dtype(x.dtype).itemsize

    # Fast path: tiny activations are better served by a fusible XLA slice than
    # by a pallas_call launch (which cannot fuse with its consumer).
    if not force_pallas and rows * l_out * itemsize < _FAST_PATH_BYTES:
        return x[:, :, :l_out]

    # Free, contiguous 2-D view: sublane axis = N*C rows, lane axis = L.
    x2 = x.reshape(rows, l)

    tr, tl = _pick_tiles(rows, l_out, itemsize, _tile_budget_bytes())
    grid = (pl.cdiv(rows, tr), pl.cdiv(l_out, tl))

    # Pure bandwidth op: read + write of the kept region (edge-block tail reads
    # are a tiny, advisory-only undercount).
    bytes_accessed = 2 * rows * l_out * itemsize

    out2 = pl.pallas_call(
        _copy_kernel,
        out_shape=jax.ShapeDtypeStruct((rows, l_out), x.dtype),
        grid_spec=pltpu.PrefetchScalarGridSpec(
            num_scalar_prefetch=0,
            grid=grid,
            in_specs=[pl.BlockSpec((tr, tl), lambda i, j: (i, j))],
            out_specs=pl.BlockSpec((tr, tl), lambda i, j: (i, j)),
        ),
        compiler_params=pltpu.CompilerParams(
            dimension_semantics=("parallel", "parallel"),
            vmem_limit_bytes=48 << 20,
        ),
        cost_estimate=pl.CostEstimate(
            flops=0, transcendentals=0, bytes_accessed=bytes_accessed),
    )(x2)

    return out2.reshape(n, c, l_out)


if __name__ == "__main__":
    key = jax.random.PRNGKey(0)

    # Small shapes consistent with a TCN conv1d activation: (batch, channels, seq).
    N, C, L = 2, 4, 16
    chomp_size = 2
    x = jax.random.normal(key, (N, C, L), dtype=jnp.float32)

    # Force the Pallas path so the kernel itself is exercised at small shapes.
    y = jax.block_until_ready(chomp1d(x, chomp_size, force_pallas=True))
    y_ref = x[:, :, :-chomp_size]
    assert y.shape == (N, C, L - chomp_size), y.shape
    assert y.dtype == x.dtype
    assert jnp.array_equal(y, y_ref), "Pallas chomp output mismatch (small case)"

    # Second case: non-128-multiple l_out plus the >=2-lane-block megacore split.
    N2, C2, L2, ch2 = 2, 4, 300, 3
    x2 = jax.random.normal(jax.random.PRNGKey(1), (N2, C2, L2), dtype=jnp.float32)
    y2 = jax.block_until_ready(chomp1d(x2, ch2, force_pallas=True))
    assert jnp.array_equal(y2, x2[:, :, :-ch2]), "Pallas chomp output mismatch (edge case)"

    # Third case: default path (tiny input -> fusible lax-slice fast path).
    y3 = jax.block_until_ready(chomp1d(x, chomp_size))
    assert jnp.array_equal(y3, y_ref), "fast-path output mismatch"

    print("KERNEL_OK")
</pallas_src>

<mosaic_0001>
module attributes {stable_mosaic.version = 11 : i64} {
  func.func @_copy_kernel(%arg0: i32, %arg1: i32, %arg2: memref<8x128xf32, #tpu.memory_space<vmem>>, %arg3: memref<8x128xf32, #tpu.memory_space<vmem>>) attributes {dimension_semantics = [#tpu.dimension_semantics<parallel>, #tpu.dimension_semantics<parallel>], iteration_bounds = array<i64: 1, 1>, scalar_prefetch = 0 : i64, scratch_operands = 0 : i64, tpu.core_type = #tpu.core_type<tc>, window_params = [{transform_indices = @transform_0, window_bounds = array<i64: 8, 128>}, {transform_indices = @transform_1, window_bounds = array<i64: 8, 128>}]} {
    %c0 = arith.constant 0 : index
    %c0_0 = arith.constant 0 : index
    %0 = vector.load %arg2[%c0, %c0_0] : memref<8x128xf32, #tpu.memory_space<vmem>>, vector<8x128xf32>
    %c0_1 = arith.constant 0 : index
    %c0_2 = arith.constant 0 : index
    %1 = vector.load %arg3[%c0_1, %c0_2] : memref<8x128xf32, #tpu.memory_space<vmem>>, vector<8x128xf32>
    tpu.vector_store %arg3[%c0_1, %c0_2], %0 {strides = array<i32>} : memref<8x128xf32, #tpu.memory_space<vmem>>, vector<8x128xf32>,
    return
  }
  func.func @transform_0(%arg0: i32, %arg1: i32) -> (i32, i32) {
    %c0_i32 = arith.constant 0 : i32
    return %arg0, %arg1 : i32, i32
  }
  func.func @transform_1(%arg0: i32, %arg1: i32) -> (i32, i32) {
    %c0_i32 = arith.constant 0 : i32
    return %arg0, %arg1 : i32, i32
  }
}

</mosaic_0001>

<bundles_post_ra>
// kernel: tpu_custom_call.1
= control target key start
LH: loop header
LB: loop body
LE: loop exit
PB: predicated region body
PF: predicated region fallthrough
CT: control target
= control target key end

     0   :  { %6 = vsyncpa [#allocation3], 0  ;;  %s102_s0 = inlined_call_operand.hbm [shape: f32[8,16], index: 0, kind: input, shape index: {}]   ;;  %s103_s1 = inlined_call_operand.hbm [shape: f32[8,14], index: 1, kind: output, shape index: {}]  }
   0x1   :  { %7 = vsyncpa [#allocation4], 0  ;;  %s84_s6 = smov [#allocation2]  }
   0x2   :  { %s14_s7 = sshll.u32 %s84_s6, 4  ;;  %s15_s7 = int_to_ptr.vmem [resolvable:$true] %s14_s7 }
   0x3   :  { %s48_s8 = scalar_lea.vmem %s15_s7, 128  ;;  %p53_p1 = scmp.lt.s32.totalorder %s15_s7, %s15_s7 }
   0x4   :  { %p49_p0 = scmp.ne.s32.totalorder %s15_s7, %s48_s8  ;;  %p54_p2 = scmp.lt.s32.totalorder %s48_s8, %s48_s8 }
   0x6   :  { %p55_p3 = por %p54_p2, %p53_p1 }
   0x8   :  { %p56_p4 = pnand %p55_p3, %p49_p0 }
   0xa   :  { %59 = shalt.err (!%p56_p4)
}
   0xb   :  { %17 = dma.hbm_to_vmem [thread:$0]  %s102_s0, 128, %s15_s7, [#allocation3]  }
   0xc   :  { %80 = dma.done.wait [#allocation3], 128  }
   0xd   :  { %81 = vsyncadd [#allocation3], 4294967168  ;;  %s85_s11 = smov [#allocation5]   ;;  %v21_v0 = vld [vmem:[#allocation2] sm:$0xff] }
   0xe   :  { %s29_s12 = sshll.u32 %s85_s11, 4  ;;  %22 = vst [vmem:[#allocation5] sm:$0xff] %v21_v0  ;;  %s30_s12 = int_to_ptr.vmem [resolvable:$true] %s29_s12 }
   0xf   :  { %s60_s13 = scalar_lea.vmem %s30_s12, 128  ;;  %p65_p6 = scmp.lt.s32.totalorder %s30_s12, %s30_s12 }
  0x10   :  { %p61_p5 = scmp.ne.s32.totalorder %s30_s12, %s60_s13  ;;  %p66_p7 = scmp.lt.s32.totalorder %s60_s13, %s60_s13 }
  0x12   :  { %p67_p8 = por %p66_p7, %p65_p6 }
  0x14   :  { %p68_p9 = pnand %p67_p8, %p61_p5 }
  0x16   :  { %71 = shalt.err (!%p68_p9)
}
  0x17   :  { %32 = dma.vmem_to_hbm [thread:$0]  %s30_s12, 128, %s103_s1, [#allocation4]  }
  0x18   :  { %82 = dma.done.wait [#allocation4], 128  }
  0x19   :  { %83 = vsyncadd [#allocation4], 4294967168 }
  0x1a   :  { %36 = vsyncpa [#allocation3], 1 }
  0x1b   :  { %37 = vsyncpa [#allocation4], 1 }

</bundles_post_ra>
